<compile_context>
chip_gen: v6e
topology: v6e:2x2x1
jax: 0.10.0
libtpu: 0.0.40
codegen_flags: <defaults>
</compile_context>

<pallas_src>
import jax
import jax.numpy as jnp
from jax.experimental import pallas as pl
from jax.experimental.pallas import tpu as pltpu


def _round_up(n: int, m: int) -> int:
    return ((n + m - 1) // m) * m


def _pad2d(a, rows: int, cols: int):
    r, c = a.shape
    if r == rows and c == cols:
        return a
    return jnp.pad(a, ((0, rows - r), (0, cols - c)))


def ffn_kernel(x_ref, w1_ref, b1_ref, w2_ref, b2_ref, o_ref, acc_ref):
    j = pl.program_id(1)

    @pl.when(j == 0)
    def _zero():
        acc_ref[...] = jnp.zeros_like(acc_ref)

    # hidden tile = relu(x @ W1[:, j*tf:(j+1)*tf] + b1_tile)   (MXU, f32 acc)
    h = jnp.dot(x_ref[...], w1_ref[...], preferred_element_type=jnp.float32)
    b1_tile = b1_ref[pl.ds(j, 1), :]                  # resident b1, row j
    h = jnp.maximum(h + b1_tile.astype(jnp.float32), 0.0)
    # dropout == identity in eval mode.

    # Partial second matmul: accumulate h_tile @ W2[j*tf:(j+1)*tf, :].
    # h is cast to the weight dtype (no-op for f32, bf16 downcast otherwise)
    # before hitting the MXU; accumulation stays f32.
    acc_ref[...] += jnp.dot(h.astype(w2_ref.dtype), w2_ref[...],
                            preferred_element_type=jnp.float32)

    @pl.when(j == pl.num_programs(1) - 1)
    def _finalize():
        # b2 added exactly once, single lane-dense store per output tile.
        o_ref[...] = (acc_ref[...]
                      + b2_ref[...].astype(jnp.float32)).astype(o_ref.dtype)


def feed_forward_block(x, w1, b1, w2, b2, *, tm=1024, tf=512,
                       compute_dtype=None):
    """x: (M, d_model); w1: (d_model, d_ff); b1: (1, d_ff);
       w2: (d_ff, d_model); b2: (1, d_model).  Weights stored pre-transposed
       as (in_features, out_features) so y = x @ W + b maps onto the MXU.
       compute_dtype: optional narrow dtype (e.g. jnp.bfloat16) for the
       MXU inputs; accumulation stays f32 and the output keeps x's dtype."""
    out_dtype = x.dtype
    if compute_dtype is not None:
        x = x.astype(compute_dtype)
        w1 = w1.astype(compute_dtype)
        w2 = w2.astype(compute_dtype)

    M, d_model = x.shape
    d_ff = w1.shape[1]
    sz = jnp.dtype(x.dtype).itemsize

    # ---- pad to hardware-friendly shapes (lanes = 128, sublanes = 8) ----
    dm_p = _round_up(d_model, 128)
    df_p = _round_up(d_ff, 128)

    # ---- per-generation VMEM budget ----
    try:
        vmem_cap = int(pltpu.get_tpu_info().vmem_capacity_bytes)
    except Exception:
        vmem_cap = 64 * 1024 * 1024            # conservative (v7x per-TC size)
    headroom = (16 * 1024 * 1024 if vmem_cap <= 64 * 1024 * 1024
                else 24 * 1024 * 1024)         # v7x: tight; v5e/v6e: ~104 MiB
    vmem_limit = max(vmem_cap - headroom, 32 * 1024 * 1024)
    budget = vmem_limit - 2 * 1024 * 1024      # safety margin inside the limit

    def tm_for(tf_c):
        # per-row-of-tm live bytes: x dbuf + out dbuf + f32 acc + f32 h temp
        per_tm = dm_p * (4 * sz + 4) + 4 * tf_c
        # W1 + W2 double buffers + resident b1 + b2
        fixed = 4 * dm_p * tf_c * sz + df_p * sz + 2 * dm_p * sz
        return max(0, ((budget - fixed) // per_tm) // 128 * 128)

    # tf: largest 128-multiple divisor of df_p <= request, but shrink it
    # before sacrificing tm (tm sets the weight-restream arithmetic intensity).
    tf_cands = [t for t in range(min(_round_up(tf, 128), df_p), 127, -128)
                if df_p % t == 0] or [128]
    tf = next((t for t in tf_cands if tm_for(t) >= min(tm, 512)), tf_cands[-1])

    tm_budget = max(128, tm_for(tf))
    tm = min(tm, tm_budget, max(128, _round_up(M, 128)))
    if M > 128:
        # >= 2 row tiles so the "parallel" axis spans both v7x TensorCores.
        tm = min(tm, max(128, _round_up(-(-M // 2), 128)))
    tm = max(tm, 128)
    m_p = _round_up(M, tm)

    xp = _pad2d(x, m_p, dm_p)
    w1p = _pad2d(w1, dm_p, df_p)
    b1p = _pad2d(b1, 1, df_p).reshape(df_p // tf, tf)   # resident; row j = step j
    w2p = _pad2d(w2, df_p, dm_p)
    b2p = _pad2d(b2, 1, dm_p)

    grid = (m_p // tm, df_p // tf)
    n_row_tiles = grid[0]

    cost = pl.CostEstimate(
        flops=4 * m_p * dm_p * df_p,                      # two matmuls
        transcendentals=0,
        bytes_accessed=sz * (m_p * dm_p * 2               # x + out
                             + n_row_tiles * 2 * dm_p * df_p  # W1+W2 re-streamed
                             + df_p + dm_p),              # biases
    )

    out_p = pl.pallas_call(
        ffn_kernel,
        out_shape=jax.ShapeDtypeStruct((m_p, dm_p), out_dtype),
        grid=grid,
        in_specs=[
            pl.BlockSpec((tm, dm_p), lambda i, j: (i, 0)),        # x rows
            pl.BlockSpec((dm_p, tf), lambda i, j: (0, j)),        # W1 col tile
            pl.BlockSpec((df_p // tf, tf), lambda i, j: (0, 0)),  # b1 (resident)
            pl.BlockSpec((tf, dm_p), lambda i, j: (j, 0)),        # W2 row tile
            pl.BlockSpec((1, dm_p), lambda i, j: (0, 0)),         # b2
        ],
        out_specs=pl.BlockSpec((tm, dm_p), lambda i, j: (i, 0)),
        scratch_shapes=[pltpu.VMEM((tm, dm_p), jnp.float32)],
        compiler_params=pltpu.CompilerParams(
            # rows parallel (megacore on v7x), hidden dim is a reduction
            dimension_semantics=("parallel", "arbitrary"),
            vmem_limit_bytes=vmem_limit,
        ),
        cost_estimate=cost,
    )(xp, w1p, b1p, w2p, b2p)

    return out_p[:M, :d_model]


if __name__ == "__main__":
    # Small shapes consistent with the module's forward:
    # x: (batch, seq, d_model) -> flattened to (batch*seq, d_model)
    batch, seq, d_model, d_ff = 2, 8, 32, 64

    key = jax.random.PRNGKey(0)
    kx, kw1, kb1, kw2, kb2 = jax.random.split(key, 5)

    x = jax.random.normal(kx, (batch, seq, d_model), dtype=jnp.float32)

    # Deterministic parameter init (PyTorch nn.Linear-style uniform bounds),
    # stored pre-transposed: (in_features, out_features).
    bound1 = 1.0 / (d_model ** 0.5)
    bound2 = 1.0 / (d_ff ** 0.5)
    w1 = jax.random.uniform(kw1, (d_model, d_ff), jnp.float32, -bound1, bound1)
    b1 = jax.random.uniform(kb1, (1, d_ff), jnp.float32, -bound1, bound1)
    w2 = jax.random.uniform(kw2, (d_ff, d_model), jnp.float32, -bound2, bound2)
    b2 = jax.random.uniform(kb2, (1, d_model), jnp.float32, -bound2, bound2)

    x2d = x.reshape(batch * seq, d_model)
    out2d = feed_forward_block(x2d, w1, b1, w2, b2)
    out = out2d.reshape(batch, seq, d_model)
    jax.block_until_ready(out)

    # Pure-JAX reference check (eval mode: dropout == identity)
    ref = jnp.maximum(x2d @ w1 + b1, 0.0) @ w2 + b2
    ref = ref.reshape(batch, seq, d_model)
    assert jnp.allclose(out, ref, atol=1e-5, rtol=1e-5), "mismatch vs reference"

    print("KERNEL_OK")
</pallas_src>

<mosaic_0001>
module attributes {stable_mosaic.version = 11 : i64} {
  func.func @ffn_kernel(%arg0: i32, %arg1: i32, %arg2: memref<128x128xf32, #tpu.memory_space<vmem>>, %arg3: memref<128x128xf32, #tpu.memory_space<vmem>>, %arg4: memref<1x128xf32, #tpu.memory_space<vmem>>, %arg5: memref<128x128xf32, #tpu.memory_space<vmem>>, %arg6: memref<1x128xf32, #tpu.memory_space<vmem>>, %arg7: memref<128x128xf32, #tpu.memory_space<vmem>>, %arg8: memref<128x128xf32, #tpu.memory_space<vmem>>) attributes {dimension_semantics = [#tpu.dimension_semantics<parallel>, #tpu.dimension_semantics<arbitrary>], iteration_bounds = array<i64: 1, 1>, scalar_prefetch = 0 : i64, scratch_operands = 1 : i64, tpu.core_type = #tpu.core_type<tc>, window_params = [{transform_indices = @transform_0, window_bounds = array<i64: 128, 128>}, {transform_indices = @transform_1, window_bounds = array<i64: 128, 128>}, {pipeline_mode = #tpu.pipeline_mode<synchronous>, transform_indices = @transform_2, window_bounds = array<i64: 1, 128>}, {transform_indices = @transform_3, window_bounds = array<i64: 128, 128>}, {pipeline_mode = #tpu.pipeline_mode<synchronous>, transform_indices = @transform_4, window_bounds = array<i64: 1, 128>}, {transform_indices = @transform_5, window_bounds = array<i64: 128, 128>}]} {
    %c0_i32 = arith.constant 0 : i32
    %0 = arith.cmpi eq, %arg1, %c0_i32 : i32
    %1 = arith.extui %0 : i1 to i32
    %c0_i32_0 = arith.constant 0 : i32
    %2 = arith.cmpi ne, %1, %c0_i32_0 : i32
    scf.if %2 {
      %cst_15 = arith.constant 0.000000e+00 : f32
      %20 = vector.broadcast %cst_15 : f32 to vector<128x128xf32>
      %c0_16 = arith.constant 0 : index
      %c0_17 = arith.constant 0 : index
      %21 = vector.load %arg8[%c0_16, %c0_17] : memref<128x128xf32, #tpu.memory_space<vmem>>, vector<128x128xf32>
      tpu.vector_store %arg8[%c0_16, %c0_17], %20 {strides = array<i32>} : memref<128x128xf32, #tpu.memory_space<vmem>>, vector<128x128xf32>,
    } else {
    }
    %c0 = arith.constant 0 : index
    %c0_1 = arith.constant 0 : index
    %3 = vector.load %arg2[%c0, %c0_1] : memref<128x128xf32, #tpu.memory_space<vmem>>, vector<128x128xf32>
    %c0_2 = arith.constant 0 : index
    %c0_3 = arith.constant 0 : index
    %4 = vector.load %arg3[%c0_2, %c0_3] : memref<128x128xf32, #tpu.memory_space<vmem>>, vector<128x128xf32>
    %cst = arith.constant dense<0.000000e+00> : vector<128x128xf32>
    %5 = tpu.matmul %3, %4, %cst {dimension_numbers = #tpu.dot_dimension_numbers<[1], [0], [0], [1], [0, 0, 1, 1], [], []>} : vector<128x128xf32>, vector<128x128xf32>, vector<128x128xf32> -> vector<128x128xf32>
    %6 = arith.index_cast %arg1 : i32 to index
    %c0_4 = arith.constant 0 : index
    %7 = vector.load %arg4[%6, %c0_4] : memref<1x128xf32, #tpu.memory_space<vmem>>, vector<1x128xf32>
    %8 = vector.broadcast %7 : vector<1x128xf32> to vector<128x128xf32>
    %9 = arith.addf %5, %8 : vector<128x128xf32>
    %cst_5 = arith.constant 0.000000e+00 : f32
    %10 = vector.broadcast %cst_5 : f32 to vector<128x128xf32>
    %11 = arith.maximumf %9, %10 : vector<128x128xf32>
    %c0_6 = arith.constant 0 : index
    %c0_7 = arith.constant 0 : index
    %12 = vector.load %arg8[%c0_6, %c0_7] : memref<128x128xf32, #tpu.memory_space<vmem>>, vector<128x128xf32>
    %c0_8 = arith.constant 0 : index
    %c0_9 = arith.constant 0 : index
    %13 = vector.load %arg5[%c0_8, %c0_9] : memref<128x128xf32, #tpu.memory_space<vmem>>, vector<128x128xf32>
    %cst_10 = arith.constant dense<0.000000e+00> : vector<128x128xf32>
    %14 = tpu.matmul %11, %13, %cst_10 {dimension_numbers = #tpu.dot_dimension_numbers<[1], [0], [0], [1], [0, 0, 1, 1], [], []>} : vector<128x128xf32>, vector<128x128xf32>, vector<128x128xf32> -> vector<128x128xf32>
    %15 = arith.addf %12, %14 : vector<128x128xf32>
    %c0_11 = arith.constant 0 : index
    %c0_12 = arith.constant 0 : index
    %16 = vector.load %arg8[%c0_11, %c0_12] : memref<128x128xf32, #tpu.memory_space<vmem>>, vector<128x128xf32>
    tpu.vector_store %arg8[%c0_11, %c0_12], %15 {strides = array<i32>} : memref<128x128xf32, #tpu.memory_space<vmem>>, vector<128x128xf32>,
    %c0_i32_13 = arith.constant 0 : i32
    %17 = arith.cmpi eq, %arg1, %c0_i32_13 : i32
    %18 = arith.extui %17 : i1 to i32
    %c0_i32_14 = arith.constant 0 : i32
    %19 = arith.cmpi ne, %18, %c0_i32_14 : i32
    scf.if %19 {
      %c0_15 = arith.constant 0 : index
      %c0_16 = arith.constant 0 : index
      %20 = vector.load %arg8[%c0_15, %c0_16] : memref<128x128xf32, #tpu.memory_space<vmem>>, vector<128x128xf32>
      %c0_17 = arith.constant 0 : index
      %c0_18 = arith.constant 0 : index
      %21 = vector.load %arg6[%c0_17, %c0_18] : memref<1x128xf32, #tpu.memory_space<vmem>>, vector<1x128xf32>
      %22 = vector.broadcast %21 : vector<1x128xf32> to vector<128x128xf32>
      %23 = arith.addf %20, %22 : vector<128x128xf32>
      %c0_19 = arith.constant 0 : index
      %c0_20 = arith.constant 0 : index
      %24 = vector.load %arg7[%c0_19, %c0_20] : memref<128x128xf32, #tpu.memory_space<vmem>>, vector<128x128xf32>
      tpu.vector_store %arg7[%c0_19, %c0_20], %23 {strides = array<i32>} : memref<128x128xf32, #tpu.memory_space<vmem>>, vector<128x128xf32>,
    } else {
    }
    return
  }
  func.func @transform_0(%arg0: i32, %arg1: i32) -> (i32, i32) {
    %c0_i32 = arith.constant 0 : i32
    %c0_i32_0 = arith.constant 0 : i32
    return %arg0, %c0_i32 : i32, i32
  }
  func.func @transform_1(%arg0: i32, %arg1: i32) -> (i32, i32) {
    %c0_i32 = arith.constant 0 : i32
    %c0_i32_0 = arith.constant 0 : i32
    return %c0_i32, %arg1 : i32, i32
  }
  func.func @transform_2(%arg0: i32, %arg1: i32) -> (i32, i32) {
    %c0_i32 = arith.constant 0 : i32
    %c0_i32_0 = arith.constant 0 : i32
    %c0_i32_1 = arith.constant 0 : i32
    return %c0_i32, %c0_i32_0 : i32, i32
  }
  func.func @transform_3(%arg0: i32, %arg1: i32) -> (i32, i32) {
    %c0_i32 = arith.constant 0 : i32
    %c0_i32_0 = arith.constant 0 : i32
    return %arg1, %c0_i32 : i32, i32
  }
  func.func @transform_4(%arg0: i32, %arg1: i32) -> (i32, i32) {
    %c0_i32 = arith.constant 0 : i32
    %c0_i32_0 = arith.constant 0 : i32
    %c0_i32_1 = arith.constant 0 : i32
    return %c0_i32, %c0_i32_0 : i32, i32
  }
  func.func @transform_5(%arg0: i32, %arg1: i32) -> (i32, i32) {
    %c0_i32 = arith.constant 0 : i32
    %c0_i32_0 = arith.constant 0 : i32
    return %arg0, %c0_i32 : i32, i32
  }
}

</mosaic_0001>

<bundles_post_ra>
// kernel: tpu_custom_call.1
= control target key start
LH: loop header
LB: loop body
LE: loop exit
PB: predicated region body
PF: predicated region fallthrough
CT: control target
= control target key end

     0   :  { %10 = vsyncpa [#allocation4], 0  ;;  %s903_s0 = inlined_call_operand.hbm [shape: f32[128,128], index: 0, kind: input, shape index: {}]   ;;  %s904_s1 = inlined_call_operand.hbm [shape: f32[128,128], index: 1, kind: input, shape index: {}]   ;;  %s905_s2 = inlined_call_operand.vmem [shape: f32[1,128], index: 2, kind: input, shape index: {}]   ;;  %s906_s3 = inlined_call_operand.hbm [shape: f32[128,128], index: 3, kind: input, shape index: {}]   ;;  %s907_s4 = inlined_call_operand.vmem [shape: f32[1,128], index: 4, kind: input, shape index: {}]   ;;  %s908_s5 = inlined_call_operand.hbm [shape: f32[128,128], index: 5, kind: output, shape index: {}]  }
   0x1   :  { %11 = vsyncpa [#allocation7], 0 }
   0x2   :  { %12 = vsyncpa [#allocation5], 0  ;;  %s837_s18 = smov [#allocation6]   ;;  %s838_s20 = smov [#allocation3]  }
   0x3   :  { %s30_s19 = sshll.u32 %s837_s18, 4  ;;  %s18_s21 = sshll.u32 %s838_s20, 4  ;;  %s31_s19 = int_to_ptr.vmem [resolvable:$true] %s30_s19  ;;  %s19_s21 = int_to_ptr.vmem [resolvable:$true] %s18_s21 }
   0x4   :  { %s759_s22 = scalar_lea.vmem %s31_s19, 2048  ;;  %p764_p1 = scmp.lt.s32.totalorder %s31_s19, %s31_s19 }
   0x5   :  { %p760_p0 = scmp.ne.s32.totalorder %s31_s19, %s759_s22  ;;  %p765_p2 = scmp.lt.s32.totalorder %s759_s22, %s759_s22 }
   0x7   :  { %p766_p3 = por %p765_p2, %p764_p1 }
   0x9   :  { %p767_p4 = pnand %p766_p3, %p760_p0 }
   0xb   :  { %770 = shalt.err (!%p767_p4)
}
   0xc   :  { %s839_s23 = smov 128   ;;  %s840_s24 = smov 8  }
   0xd   :  { %36 = dma.hbm_to_vmem [thread:$0]  %s904_s1, 2048, %s31_s19, [#allocation7], %s839_s23, %s839_s23, %s840_s24  }
   0xe   :  { %s779_s27 = scalar_lea.vmem %s19_s21, 2048  ;;  %p784_p6 = scmp.lt.s32.totalorder %s19_s21, %s19_s21 }
   0xf   :  { %p780_p5 = scmp.ne.s32.totalorder %s19_s21, %s779_s27  ;;  %p785_p7 = scmp.lt.s32.totalorder %s779_s27, %s779_s27 }
  0x11   :  { %p786_p8 = por %p785_p7, %p784_p6 }
  0x13   :  { %p787_p9 = pnand %p786_p8, %p780_p5 }
  0x15   :  { %790 = shalt.err (!%p787_p9)
}
  0x16   :  { %24 = dma.hbm_to_vmem [thread:$0]  %s903_s0, 2048, %s19_s21, [#allocation4], %s839_s23, %s839_s23, %s840_s24  }
  0x17   :  { %s841_s30 = smov [#allocation8]  }
  0x18   :  { %s44_s6 = sshll.u32 %s841_s30, 4  ;;  %s45_s6 = int_to_ptr.vmem [resolvable:$true] %s44_s6 }
  0x19   :  { %s799_s7 = scalar_lea.vmem %s45_s6, 2048  ;;  %p804_p11 = scmp.lt.s32.totalorder %s45_s6, %s45_s6 }
  0x1a   :  { %p800_p10 = scmp.ne.s32.totalorder %s45_s6, %s799_s7  ;;  %p805_p12 = scmp.lt.s32.totalorder %s799_s7, %s799_s7 }
  0x1c   :  { %p806_p13 = por %p805_p12, %p804_p11 }
  0x1e   :  { %p807_p0 = pnand %p806_p13, %p800_p10 }
  0x20   :  { %810 = shalt.err (!%p807_p0)
}
  0x21   :  { %50 = dma.hbm_to_vmem [thread:$0]  %s906_s3, 2048, %s45_s6, [#allocation7], %s839_s23, %s839_s23, %s840_s24  }
  0x22   :  { %831 = dma.done.wait [#allocation4], 2048  }
  0x23   :  { %832 = vsyncadd [#allocation4], 4294965248 }
  0x24   :  { %833 = dma.done.wait [#allocation7], 4096  }
  0x25   :  { %834 = vsyncadd [#allocation7], 4294963200  ;;  %v113_v0 = vld [vmem:[#allocation6 + $0x78] sm:$0xff]  ;;  %v112_v1 = vld [vmem:[#allocation6 + $0x70] sm:$0xff] }
  0x26   :  { %633 = vmatprep.subr.mxu0 %v113_v0  ;;  %v111_v2 = vld [vmem:[#allocation6 + $0x68] sm:$0xff]  ;;  %v110_v3 = vld [vmem:[#allocation6 + $0x60] sm:$0xff]  ;;  %v109_v5 = vld [vmem:[#allocation6 + $0x58] sm:$0xff] }
  0x27   :  { %634 = vmatpush3.msra.mxu0 %v113_v0  ;;  %v82_v4 = vld [vmem:[#allocation3] sm:$0xff]  ;;  %v108_v6 = vld [vmem:[#allocation6 + $0x50] sm:$0xff]  ;;  %v107_v7 = vld [vmem:[#allocation6 + $0x48] sm:$0xff] }
  0x28   :  { %635 = vmatprep.subr.mxu0 %v112_v1  ;;  %665 = vmatprep.mubr.f32.mxu0 %v82_v4  ;;  %v313_v8 = vld [vmem:[#allocation8 + $0x78] sm:$0xff]  ;;  %v312_v9 = vld [vmem:[#allocation8 + $0x70] sm:$0xff]  ;;  %v106_v10 = vld [vmem:[#allocation6 + $0x40] sm:$0xff] }
  0x29   :  { %636 = vmatpush3.msra.mxu0 %v112_v1  ;;  %689 = vmatprep.subr.mxu1 %v313_v8  ;;  %v311_v11 = vld [vmem:[#allocation8 + $0x68] sm:$0xff]  ;;  %v105_v12 = vld [vmem:[#allocation6 + $0x38] sm:$0xff]  ;;  %v310_v13 = vld [vmem:[#allocation8 + $0x60] sm:$0xff] }
  0x2a   :  { %637 = vmatprep.subr.mxu0 %v111_v2  ;;  %690 = vmatpush3.msra.mxu1 %v313_v8  ;;  %v104_v14 = vld [vmem:[#allocation6 + $0x30] sm:$0xff]  ;;  %v309_v15 = vld [vmem:[#allocation8 + $0x58] sm:$0xff]  ;;  %v103_v16 = vld [vmem:[#allocation6 + $0x28] sm:$0xff] }
  0x2b   :  { %638 = vmatpush3.msra.mxu0 %v111_v2  ;;  %691 = vmatprep.subr.mxu1 %v312_v9  ;;  %v308_v17 = vld [vmem:[#allocation8 + $0x50] sm:$0xff]  ;;  %v102_v18 = vld [vmem:[#allocation6 + $0x20] sm:$0xff]  ;;  %v307_v19 = vld [vmem:[#allocation8 + $0x48] sm:$0xff] }
  0x2c   :  { %639 = vmatprep.subr.mxu0 %v110_v3  ;;  %692 = vmatpush3.msra.mxu1 %v312_v9  ;;  %v101_v20 = vld [vmem:[#allocation6 + $0x18] sm:$0xff]  ;;  %v306_v21 = vld [vmem:[#allocation8 + $0x40] sm:$0xff]  ;;  %v100_v22 = vld [vmem:[#allocation6 + $0x10] sm:$0xff] }
  0x2d   :  { %640 = vmatpush3.msra.mxu0 %v110_v3  ;;  %693 = vmatprep.subr.mxu1 %v311_v11  ;;  %v305_v23 = vld [vmem:[#allocation8 + $0x38] sm:$0xff]  ;;  %v99_v24 = vld [vmem:[#allocation6 + $0x8] sm:$0xff]  ;;  %v304_v25 = vld [vmem:[#allocation8 + $0x30] sm:$0xff] }
  0x2e   :  { %641 = vmatprep.subr.mxu0 %v109_v5  ;;  %694 = vmatpush3.msra.mxu1 %v311_v11  ;;  %v98_v26 = vld [vmem:[#allocation6] sm:$0xff]  ;;  %v303_v27 = vld [vmem:[#allocation8 + $0x28] sm:$0xff]  ;;  %v84_v30 = vld [vmem:[#allocation3 + $0x10] sm:$0xff] }
  0x2f   :  { %642 = vmatpush3.msra.mxu0 %v109_v5  ;;  %695 = vmatprep.subr.mxu1 %v310_v13  ;;  %v83_v28 = vld [vmem:[#allocation3 + $0x8] sm:$0xff]  ;;  %v302_v29 = vld [vmem:[#allocation8 + $0x20] sm:$0xff]  ;;  %v85_v31 = vld [vmem:[#allocation3 + $0x18] sm:$0xff] }
  0x30   :  { %643 = vmatprep.subr.mxu0 %v108_v6  ;;  %696 = vmatpush3.msra.mxu1 %v310_v13  ;;  %v86_v32 = vld [vmem:[#allocation3 + $0x20] sm:$0xff]  ;;  %v87_v33 = vld [vmem:[#allocation3 + $0x28] sm:$0xff]  ;;  %v88_v34 = vld [vmem:[#allocation3 + $0x30] sm:$0xff] }
  0x31   :  { %644 = vmatpush3.msra.mxu0 %v108_v6  ;;  %697 = vmatprep.subr.mxu1 %v309_v15  ;;  %v89_v35 = vld [vmem:[#allocation3 + $0x38] sm:$0xff]  ;;  %v90_v36 = vld [vmem:[#allocation3 + $0x40] sm:$0xff]  ;;  %v91_v37 = vld [vmem:[#allocation3 + $0x48] sm:$0xff] }
  0x32   :  { %645 = vmatprep.subr.mxu0 %v107_v7  ;;  %698 = vmatpush3.msra.mxu1 %v309_v15  ;;  %v92_v38 = vld [vmem:[#allocation3 + $0x50] sm:$0xff]  ;;  %v93_v39 = vld [vmem:[#allocation3 + $0x58] sm:$0xff]  ;;  %v94_v40 = vld [vmem:[#allocation3 + $0x60] sm:$0xff] }
  0x33   :  { %646 = vmatpush3.msra.mxu0 %v107_v7  ;;  %699 = vmatprep.subr.mxu1 %v308_v17  ;;  %v95_v41 = vld [vmem:[#allocation3 + $0x68] sm:$0xff]  ;;  %v96_v42 = vld [vmem:[#allocation3 + $0x70] sm:$0xff]  ;;  %v97_v43 = vld [vmem:[#allocation3 + $0x78] sm:$0xff] }
  0x34   :  { %647 = vmatprep.subr.mxu0 %v106_v10  ;;  %700 = vmatpush3.msra.mxu1 %v308_v17  ;;  %v301_v44 = vld [vmem:[#allocation8 + $0x18] sm:$0xff]  ;;  %v300_v45 = vld [vmem:[#allocation8 + $0x10] sm:$0xff]  ;;  %v299_v46 = vld [vmem:[#allocation8 + $0x8] sm:$0xff] }
  0x35   :  { %648 = vmatpush3.msra.mxu0 %v106_v10  ;;  %701 = vmatprep.subr.mxu1 %v307_v19  ;;  %v298_v47 = vld [vmem:[#allocation8] sm:$0xff] }
  0x36   :  { %649 = vmatprep.subr.mxu0 %v105_v12  ;;  %702 = vmatpush3.msra.mxu1 %v307_v19  ;;  %v567_v48 = vld [vmem:[%s905_s2] ss:$0 sm:$0xff] }
  0x37   :  { %650 = vmatpush3.msra.mxu0 %v105_v12  ;;  %703 = vmatprep.subr.mxu1 %v306_v21 }
  0x38   :  { %651 = vmatprep.subr.mxu0 %v104_v14  ;;  %704 = vmatpush3.msra.mxu1 %v306_v21 }
  0x39   :  { %652 = vmatpush3.msra.mxu0 %v104_v14  ;;  %705 = vmatprep.subr.mxu1 %v305_v23 }
  0x3a   :  { %653 = vmatprep.subr.mxu0 %v103_v16  ;;  %706 = vmatpush3.msra.mxu1 %v305_v23 }
  0x3b   :  { %654 = vmatpush3.msra.mxu0 %v103_v16  ;;  %707 = vmatprep.subr.mxu1 %v304_v25 }
  0x3c   :  { %655 = vmatprep.subr.mxu0 %v102_v18  ;;  %708 = vmatpush3.msra.mxu1 %v304_v25 }
  0x3d   :  { %656 = vmatpush3.msra.mxu0 %v102_v18  ;;  %709 = vmatprep.subr.mxu1 %v303_v27 }
  0x3e   :  { %657 = vmatprep.subr.mxu0 %v101_v20  ;;  %710 = vmatpush3.msra.mxu1 %v303_v27 }
  0x3f   :  { %658 = vmatpush3.msra.mxu0 %v101_v20  ;;  %711 = vmatprep.subr.mxu1 %v302_v29 }
  0x40   :  { %659 = vmatprep.subr.mxu0 %v100_v22  ;;  %712 = vmatpush3.msra.mxu1 %v302_v29 }
  0x41   :  { %660 = vmatpush3.msra.mxu0 %v100_v22  ;;  %713 = vmatprep.subr.mxu1 %v301_v44 }
  0x42   :  { %661 = vmatprep.subr.mxu0 %v99_v24  ;;  %714 = vmatpush3.msra.mxu1 %v301_v44 }
  0x43   :  { %662 = vmatpush3.msra.mxu0 %v99_v24  ;;  %715 = vmatprep.subr.mxu1 %v300_v45 }
  0x44   :  { %663 = vmatprep.subr.mxu0 %v98_v26  ;;  %716 = vmatpush3.msra.mxu1 %v300_v45 }
  0x45   :  { %664 = vmatpush3.msra.mxu0 %v98_v26  ;;  %717 = vmatprep.subr.mxu1 %v299_v46 }
  0x46   :  { %666 = vmatmul.mubr.f32.vlgmr.msra.gmra.mxu0 %v83_v28  ;;  %718 = vmatpush3.msra.mxu1 %v299_v46 }
  0x47   :  { %668 = vmatprep.mubr.f32.mxu0 %v84_v30  ;;  %719 = vmatprep.subr.mxu1 %v298_v47 }
  0x48   :  { %720 = vmatpush3.msra.mxu1 %v298_v47 }
  0x4a   :  { %669 = vmatmul.mubr.f32.gmra.mxu0 %v85_v31 }
  0x4b   :  { %671 = vmatprep.mubr.f32.mxu0 %v86_v32 }
  0x4e   :  { %672 = vmatmul.mubr.f32.gmra.mxu0 %v87_v33  ;;  %v568_v33 = vld [vmem:[%s907_s4] ss:$0 sm:$0xff]  ;;  %s842_s4 = smov [#allocation9]  }
  0x4f   :  { %674 = vmatprep.mubr.f32.mxu0 %v88_v34  ;;  %s554_s10 = sshll.u32 %s842_s4, 4  ;;  %s555_s10 = int_to_ptr.vmem [resolvable:$true] %s554_s10 }
  0x50   :  { %s811_s11 = scalar_lea.vmem %s555_s10, 2048  ;;  %p816_p2 = scmp.lt.s32.totalorder %s555_s10, %s555_s10 }
  0x51   :  { %p812_p1 = scmp.ne.s32.totalorder %s555_s10, %s811_s11  ;;  %p817_p3 = scmp.lt.s32.totalorder %s811_s11, %s811_s11 }
  0x52   :  { %675 = vmatmul.mubr.f32.gmra.mxu0 %v89_v35 }
  0x53   :  { %677 = vmatprep.mubr.f32.mxu0 %v90_v36  ;;  %p818_p4 = por %p817_p3, %p816_p2 }
  0x55   :  { %p819_p5 = pnand %p818_p4, %p812_p1 }
  0x56   :  { %678 = vmatmul.mubr.f32.gmra.mxu0 %v91_v37 }
  0x57   :  { %680 = vmatprep.mubr.f32.mxu0 %v92_v38 }
  0x5a   :  { %681 = vmatmul.mubr.f32.gmra.mxu0 %v93_v39 }
  0x5b   :  { %683 = vmatprep.mubr.f32.mxu0 %v94_v40 }
  0x5e   :  { %684 = vmatmul.mubr.f32.gmra.mxu0 %v95_v41 }
  0x5f   :  { %686 = vmatprep.mubr.f32.mxu0 %v96_v42 }
  0x62   :  { %687 = vmatmul.mubr.f32.gmra.mxu0 %v97_v43 }
 0x106   :  { %v667_v49 = vpop.f32.mrf.mxu0 }
 0x107   :  { %v193_v50 = vadd.f32 %v667_v49, %v567_v48 }
 0x108   :  { %v187_v51 = vpop.f32.mrf.mxu0 }
 0x109   :  { %v188_v52 = vadd.f32 %v567_v48, %v187_v51  ;;  %v267_v55 = vmax.f32 %v193_v50, 0.0 }
 0x10a   :  { %v670_v53 = vpop.f32.mrf.mxu0 }
 0x10b   :  { %v266_v54 = vmax.f32 %v188_v52, 0.0  ;;  %v203_v56 = vadd.f32 %v670_v53, %v567_v48 }
 0x10c   :  { %v197_v57 = vpop.f32.mrf.mxu0 }
 0x10d   :  { %v198_v58 = vadd.f32 %v567_v48, %v197_v57  ;;  %721 = vmatprep.mubr.f32.mxu1 %v266_v54  ;;  %v269_v61 = vmax.f32 %v203_v56, 0.0 }
 0x10e   :  { %v673_v59 = vpop.f32.mrf.mxu0  ;;  %722 = vmatmul.mubr.f32.vlgmr.msra.gmra.mxu1 %v267_v55 }
 0x10f   :  { %v268_v60 = vmax.f32 %v198_v58, 0.0  ;;  %v213_v62 = vadd.f32 %v673_v59, %v567_v48 }
 0x110   :  { %v207_v63 = vpop.f32.mrf.mxu0 }
 0x111   :  { %v208_v0 = vadd.f32 %v567_v48, %v207_v63  ;;  %724 = vmatprep.mubr.f32.mxu1 %v268_v60  ;;  %v271_v3 = vmax.f32 %v213_v62, 0.0 }
 0x112   :  { %v676_v1 = vpop.f32.mrf.mxu0  ;;  %725 = vmatmul.mubr.f32.gmra.mxu1 %v269_v61 }
 0x113   :  { %v270_v2 = vmax.f32 %v208_v0, 0.0  ;;  %v223_v4 = vadd.f32 %v676_v1, %v567_v48 }
 0x114   :  { %v217_v5 = vpop.f32.mrf.mxu0 }
 0x115   :  { %v218_v6 = vadd.f32 %v567_v48, %v217_v5  ;;  %727 = vmatprep.mubr.f32.mxu1 %v270_v2  ;;  %v273_v9 = vmax.f32 %v223_v4, 0.0 }
 0x116   :  { %v679_v7 = vpop.f32.mrf.mxu0  ;;  %728 = vmatmul.mubr.f32.gmra.mxu1 %v271_v3 }
 0x117   :  { %v272_v8 = vmax.f32 %v218_v6, 0.0  ;;  %v233_v10 = vadd.f32 %v679_v7, %v567_v48 }
 0x118   :  { %v227_v11 = vpop.f32.mrf.mxu0 }
 0x119   :  { %v228_v12 = vadd.f32 %v567_v48, %v227_v11  ;;  %730 = vmatprep.mubr.f32.mxu1 %v272_v8  ;;  %v275_v15 = vmax.f32 %v233_v10, 0.0 }
 0x11a   :  { %v682_v13 = vpop.f32.mrf.mxu0  ;;  %731 = vmatmul.mubr.f32.gmra.mxu1 %v273_v9 }
 0x11b   :  { %v274_v14 = vmax.f32 %v228_v12, 0.0  ;;  %v243_v16 = vadd.f32 %v682_v13, %v567_v48 }
 0x11c   :  { %v237_v17 = vpop.f32.mrf.mxu0 }
 0x11d   :  { %v238_v18 = vadd.f32 %v567_v48, %v237_v17  ;;  %733 = vmatprep.mubr.f32.mxu1 %v274_v14  ;;  %v277_v21 = vmax.f32 %v243_v16, 0.0 }
 0x11e   :  { %v685_v19 = vpop.f32.mrf.mxu0  ;;  %734 = vmatmul.mubr.f32.gmra.mxu1 %v275_v15 }
 0x11f   :  { %v276_v20 = vmax.f32 %v238_v18, 0.0  ;;  %v253_v22 = vadd.f32 %v685_v19, %v567_v48 }
 0x120   :  { %v247_v23 = vpop.f32.mrf.mxu0 }
 0x121   :  { %v248_v24 = vadd.f32 %v567_v48, %v247_v23  ;;  %736 = vmatprep.mubr.f32.mxu1 %v276_v20  ;;  %v279_v27 = vmax.f32 %v253_v22, 0.0 }
 0x122   :  { %v688_v25 = vpop.f32.mrf.mxu0  ;;  %737 = vmatmul.mubr.f32.gmra.mxu1 %v277_v21 }
 0x123   :  { %v278_v26 = vmax.f32 %v248_v24, 0.0  ;;  %v263_v28 = vadd.f32 %v688_v25, %v567_v48 }
 0x124   :  { %v257_v29 = vpop.f32.mrf.mxu0 }
 0x125   :  { %v258_v30 = vadd.f32 %v567_v48, %v257_v29  ;;  %739 = vmatprep.mubr.f32.mxu1 %v278_v26  ;;  %v281_v32 = vmax.f32 %v263_v28, 0.0 }
 0x126   :  { %740 = vmatmul.mubr.f32.gmra.mxu1 %v279_v27 }
 0x127   :  { %v280_v31 = vmax.f32 %v258_v30, 0.0 }
 0x129   :  { %742 = vmatprep.mubr.f32.mxu1 %v280_v31 }
 0x12a   :  { %743 = vmatmul.mubr.f32.gmra.mxu1 %v281_v32 }
 0x1ce   :  { %v723_v34 = vpop.f32.mrf.mxu1 }
 0x1cf   :  { %v518_v35 = vadd.f32 %v723_v34, %v568_v33 }
 0x1d0   :  { %v380_v36 = vpop.f32.mrf.mxu1 }
 0x1d1   :  { %534 = vst [vmem:[#allocation9 + $0x8] sm:$0xff] %v518_v35  ;;  %v517_v37 = vadd.f32 %v568_v33, %v380_v36 }
 0x1d2   :  { %v726_v38 = vpop.f32.mrf.mxu1 }
 0x1d3   :  { %533 = vst [vmem:[#allocation9] sm:$0xff] %v517_v37  ;;  %v520_v39 = vadd.f32 %v726_v38, %v568_v33 }
 0x1d4   :  { %v390_v40 = vpop.f32.mrf.mxu1 }
 0x1d5   :  { %536 = vst [vmem:[#allocation9 + $0x18] sm:$0xff] %v520_v39  ;;  %v519_v41 = vadd.f32 %v568_v33, %v390_v40 }
 0x1d6   :  { %v729_v42 = vpop.f32.mrf.mxu1 }
 0x1d7   :  { %535 = vst [vmem:[#allocation9 + $0x10] sm:$0xff] %v519_v41  ;;  %v522_v43 = vadd.f32 %v729_v42, %v568_v33 }
 0x1d8   :  { %v400_v44 = vpop.f32.mrf.mxu1 }
 0x1d9   :  { %538 = vst [vmem:[#allocation9 + $0x28] sm:$0xff] %v522_v43  ;;  %v521_v45 = vadd.f32 %v568_v33, %v400_v44 }
 0x1da   :  { %v732_v46 = vpop.f32.mrf.mxu1 }
 0x1db   :  { %537 = vst [vmem:[#allocation9 + $0x20] sm:$0xff] %v521_v45  ;;  %v524_v47 = vadd.f32 %v732_v46, %v568_v33 }
 0x1dc   :  { %v410_v48 = vpop.f32.mrf.mxu1 }
 0x1dd   :  { %540 = vst [vmem:[#allocation9 + $0x38] sm:$0xff] %v524_v47  ;;  %v523_v49 = vadd.f32 %v568_v33, %v410_v48 }
 0x1de   :  { %v735_v50 = vpop.f32.mrf.mxu1 }
 0x1df   :  { %539 = vst [vmem:[#allocation9 + $0x30] sm:$0xff] %v523_v49  ;;  %v526_v51 = vadd.f32 %v735_v50, %v568_v33 }
 0x1e0   :  { %v420_v52 = vpop.f32.mrf.mxu1 }
 0x1e1   :  { %542 = vst [vmem:[#allocation9 + $0x48] sm:$0xff] %v526_v51  ;;  %v525_v53 = vadd.f32 %v568_v33, %v420_v52 }
 0x1e2   :  { %v738_v54 = vpop.f32.mrf.mxu1 }
 0x1e3   :  { %541 = vst [vmem:[#allocation9 + $0x40] sm:$0xff] %v525_v53  ;;  %v528_v55 = vadd.f32 %v738_v54, %v568_v33 }
 0x1e4   :  { %v430_v56 = vpop.f32.mrf.mxu1 }
 0x1e5   :  { %544 = vst [vmem:[#allocation9 + $0x58] sm:$0xff] %v528_v55  ;;  %v527_v57 = vadd.f32 %v568_v33, %v430_v56 }
 0x1e6   :  { %v741_v58 = vpop.f32.mrf.mxu1 }
 0x1e7   :  { %543 = vst [vmem:[#allocation9 + $0x50] sm:$0xff] %v527_v57  ;;  %v530_v59 = vadd.f32 %v741_v58, %v568_v33 }
 0x1e8   :  { %v440_v60 = vpop.f32.mrf.mxu1 }
 0x1e9   :  { %546 = vst [vmem:[#allocation9 + $0x68] sm:$0xff] %v530_v59  ;;  %v529_v61 = vadd.f32 %v568_v33, %v440_v60 }
 0x1ea   :  { %v744_v62 = vpop.f32.mrf.mxu1 }
 0x1eb   :  { %545 = vst [vmem:[#allocation9 + $0x60] sm:$0xff] %v529_v61  ;;  %v532_v63 = vadd.f32 %v744_v62, %v568_v33 }
 0x1ec   :  { %v450_v0 = vpop.f32.mrf.mxu1 }
 0x1ed   :  { %548 = vst [vmem:[#allocation9 + $0x78] sm:$0xff] %v532_v63  ;;  %v531_v1 = vadd.f32 %v568_v33, %v450_v0 }
 0x1ef   :  { %547 = vst [vmem:[#allocation9 + $0x70] sm:$0xff] %v531_v1 }
 0x1f0   :  { %822 = shalt.err (!%p819_p5)
}
 0x1f1   :  { %560 = dma.vmem_to_hbm [thread:$0]  %s555_s10, 2048, %s908_s5, [#allocation5], %s839_s23, %s839_s23, %s840_s24  }
 0x1f2   :  { %835 = dma.done.wait [#allocation5], 2048  }
 0x1f3   :  { %836 = vsyncadd [#allocation5], 4294965248 }
 0x1f4   :  { %564 = vsyncpa [#allocation4], 1 }
 0x1f5   :  { %565 = vsyncpa [#allocation7], 1 }
 0x1f6   :  { %566 = vsyncpa [#allocation5], 1 }

</bundles_post_ra>
